<compile_context>
chip_gen: v5e
topology: v5e:2x2
jax: 0.10.0
libtpu: 0.0.40
codegen_flags: <defaults>
</compile_context>

<pallas_src>
import functools

import jax
import jax.numpy as jnp
from jax.experimental import pallas as pl
from jax.experimental.pallas import tpu as pltpu


# ------------------------------ small helpers --------------------------------


def _round_up(x, m):
    return (x + m - 1) // m * m


def _choose_tiles(B, P, tile_b=None, tile_p=None):
    if tile_b is None:
        tile_b = min(_round_up(B, 8), 32)
    tile_b = _round_up(tile_b, 8)
    if tile_p is None:
        # target ~1024 rows (TB * TP) per grid step
        tile_p = max(8, min(_round_up(P, 8), _round_up(max(1, 1024 // tile_b), 8)))
    tile_p = _round_up(tile_p, 8)
    return tile_b, tile_p


# ----------------------------- Pallas kernel ----------------------------------


def _pfn_kernel(n_phi, n_fc, x_ref, *refs):
    phi_refs = refs[: 2 * n_phi]
    fc_refs = refs[2 * n_phi : 2 * (n_phi + n_fc)]
    out_ref = refs[2 * (n_phi + n_fc)]
    acc_ref = refs[2 * (n_phi + n_fc) + 1]

    p_idx = pl.program_id(1)

    @pl.when(p_idx == 0)
    def _():
        acc_ref[...] = jnp.zeros_like(acc_ref)

    tb, tp, c = x_ref.shape
    x = x_ref[...].reshape(tb * tp, c)                     # (TB*TP, C_in)

    # particle is padding iff sum_c |x| == mask_val (= 0)
    keep = jnp.sum(jnp.abs(x.astype(jnp.float32)), axis=-1, keepdims=True) != 0.0

    # Phi stack: Conv1d(k=1) + (folded) BN + ReLU  ->  plain MXU matmuls
    h = x
    a_last = None
    for i in range(n_phi):
        w = phi_refs[2 * i][...]                           # (C_in_i, C_out_i_pad)
        b = phi_refs[2 * i + 1][...]                       # (1, C_out_i_pad) f32
        z = jnp.dot(h, w, preferred_element_type=jnp.float32) + b
        a_last = jnp.maximum(z, 0.0)
        if i + 1 < n_phi:
            h = a_last.astype(x.dtype)

    # Mask once before pooling (row-local layers => equivalent to masking every
    # layer as the reference does), then segment-sum over the particle tile.
    masked = jnp.where(keep, a_last, 0.0)                  # f32 (TB*TP, latent_pad)
    acc_ref[...] += jnp.sum(masked.reshape(tb, tp, -1), axis=1)

    # F head: runs once per batch tile, on the last particle step.
    @pl.when(p_idx == pl.num_programs(1) - 1)
    def _():
        z = acc_ref[...]                                   # (TB, latent_pad) f32
        for i in range(n_fc):
            w = fc_refs[2 * i][...]                        # (in_pad, out_pad)
            b = fc_refs[2 * i + 1][...]                    # (1, out_pad) f32
            z = jnp.dot(z.astype(w.dtype), w, preferred_element_type=jnp.float32) + b
            if i < n_fc - 1:
                z = jnp.maximum(z, 0.0)
        out_ref[...] = z.astype(out_ref.dtype)


# ---------------------- raw (module-style) parameters -------------------------


def init_params(key, input_dims, num_classes, phi_sizes, f_sizes):
    keys = iter(jax.random.split(key, 128))

    def nrm(shape, scale=0.1):
        return scale * jax.random.normal(next(keys), shape, dtype=jnp.float32)

    # input BatchNorm1d(input_dims): gamma, beta, running_mean, running_var
    input_bn = (
        1.0 + nrm((input_dims,)),
        nrm((input_dims,)),
        nrm((input_dims,)),
        1.0 + jnp.abs(nrm((input_dims,))),
    )

    phi = []
    c_in = input_dims
    for c_out in phi_sizes:
        phi.append(
            (
                nrm((c_out, c_in)),                 # Conv1d weight (C_out, C_in, 1) squeezed
                nrm((c_out,)),                      # Conv1d bias
                1.0 + nrm((c_out,)),                # BN gamma
                nrm((c_out,)),                      # BN beta
                nrm((c_out,)),                      # BN running mean
                1.0 + jnp.abs(nrm((c_out,))),       # BN running var
            )
        )
        c_in = c_out

    fc = []
    d_in = phi_sizes[-1]
    for d_out in list(f_sizes) + [num_classes]:
        fc.append((nrm((d_out, d_in)), nrm((d_out,))))     # nn.Linear (out, in), (out,)
        d_in = d_out

    return {"input_bn": input_bn, "phi": phi, "fc": fc}


# ------------------- fold BN + pad to lane-dense kernel params ----------------


def fold_params(raw, compute_dtype=jnp.bfloat16, eps=1e-5):
    g0, bt0, m0, v0 = raw["input_bn"]
    s0 = g0 / jnp.sqrt(v0 + eps)                  # input BN scale (C,)
    t0 = bt0 - s0 * m0                            # input BN bias  (C,)

    phi = []
    prev_real = prev_pad = None
    for i, (wc, bc, g, bt, m, v) in enumerate(raw["phi"]):
        a = g / jnp.sqrt(v + eps)                 # per-layer BN scale
        w = wc.T * a[None, :]                     # (C_in, C_out) with BN scale folded in
        c = a * (bc - m) + bt                     # folded bias
        if i == 0:
            # fold the input BatchNorm affine into the first Phi layer
            c = c + t0 @ w
            w = s0[:, None] * w
        else:
            w = jnp.pad(w, ((0, prev_pad - prev_real), (0, 0)))
        c_out = w.shape[1]
        out_pad = _round_up(c_out, 128)
        w = jnp.pad(w, ((0, 0), (0, out_pad - c_out)))
        c = jnp.pad(c, (0, out_pad - c_out))
        phi.append((w.astype(compute_dtype), c.reshape(1, -1).astype(jnp.float32)))
        prev_real, prev_pad = c_out, out_pad

    fc = []
    for wl, bl in raw["fc"]:
        w = jnp.pad(wl.T, ((0, prev_pad - prev_real), (0, 0)))   # (in_pad, out)
        d_out = w.shape[1]
        out_pad = _round_up(d_out, 128)
        w = jnp.pad(w, ((0, 0), (0, out_pad - d_out)))
        b = jnp.pad(bl, (0, out_pad - d_out))
        fc.append((w.astype(compute_dtype), b.reshape(1, -1).astype(jnp.float32)))
        prev_real, prev_pad = d_out, out_pad

    return {"phi": phi, "fc": fc}


# ---------------------------------- wrapper -----------------------------------


def particle_flow_network(x_ncl, kparams, num_classes, *, tile_b=None, tile_p=None):
    """x_ncl: (B, input_dims, P) float32 -- same layout as the PyTorch module."""
    phi, fc = kparams["phi"], kparams["fc"]
    n_phi, n_fc = len(phi), len(fc)
    latent_pad = phi[-1][0].shape[1]
    nc_pad = fc[-1][0].shape[1]
    cdtype = phi[0][0].dtype

    B, C, P = x_ncl.shape
    tb, tp = _choose_tiles(B, P, tile_b, tile_p)
    b_pad = _round_up(B, tb)
    p_pad = _round_up(P, tp)

    x3 = jnp.transpose(x_ncl, (0, 2, 1)).astype(cdtype)    # (B, P, C)
    if (b_pad, p_pad) != (B, P):
        # zero rows are masked out inside the kernel (sum|x| == 0)
        x3 = jnp.pad(x3, ((0, b_pad - B), (0, p_pad - P), (0, 0)))

    flat = [a for layer in (phi + fc) for a in layer]

    def _resident(shape):
        nd = len(shape)
        return pl.BlockSpec(shape, lambda b, p, _nd=nd: (0,) * _nd)

    kernel = functools.partial(_pfn_kernel, n_phi, n_fc)
    out = pl.pallas_call(
        kernel,
        out_shape=jax.ShapeDtypeStruct((b_pad, nc_pad), jnp.float32),
        grid_spec=pltpu.PrefetchScalarGridSpec(
            num_scalar_prefetch=0,
            grid=(b_pad // tb, p_pad // tp),
            in_specs=[pl.BlockSpec((tb, tp, C), lambda b, p: (b, p, 0))]
            + [_resident(tuple(a.shape)) for a in flat],
            out_specs=pl.BlockSpec((tb, nc_pad), lambda b, p: (b, 0)),
            scratch_shapes=[pltpu.VMEM((tb, latent_pad), jnp.float32)],
        ),
        compiler_params=pltpu.CompilerParams(
            dimension_semantics=("parallel", "arbitrary"),
        ),
    )(x3, *flat)
    return out[:B, :num_classes]


# ---------------- pure-JAX reference (literal module semantics) ---------------


def particle_flow_network_ref(x_ncl, raw, eps=1e-5):
    g0, bt0, m0, v0 = raw["input_bn"]
    mask = (jnp.sum(jnp.abs(x_ncl), axis=1, keepdims=True) != 0.0).astype(x_ncl.dtype)
    s0 = (g0 / jnp.sqrt(v0 + eps))[None, :, None]
    h = (x_ncl - m0[None, :, None]) * s0 + bt0[None, :, None]
    h = h * mask
    for wc, bc, g, bt, m, v in raw["phi"]:
        z = jnp.einsum("oc,bcp->bop", wc, h) + bc[None, :, None]
        a = (g / jnp.sqrt(v + eps))[None, :, None]
        z = (z - m[None, :, None]) * a + bt[None, :, None]
        h = jnp.maximum(z, 0.0) * mask
    h = h * mask
    z = jnp.sum(h, axis=-1)                                # (B, latent)
    for i, (wl, bl) in enumerate(raw["fc"]):
        z = z @ wl.T + bl
        if i < len(raw["fc"]) - 1:
            z = jnp.maximum(z, 0.0)
    return z


# ------------------------------------ main ------------------------------------


if __name__ == "__main__":
    B, input_dims, P = 12, 4, 24
    num_classes = 5
    Phi_sizes = (32, 32, 64)
    F_sizes = (32, 32, 32)

    key = jax.random.PRNGKey(0)
    kx, kp = jax.random.split(key)

    x = jax.random.normal(kx, (B, input_dims, P), dtype=jnp.float32)
    # zero out the second half of the particles so the mask path is exercised
    x = x.at[:, :, P // 2 :].set(0.0)

    raw = init_params(kp, input_dims, num_classes, Phi_sizes, F_sizes)
    kparams = fold_params(raw, compute_dtype=jnp.bfloat16)

    # tile_b=8 / tile_p=8 -> grid (2, 3): exercises the batch-parallel axis,
    # the particle-reduction accumulator, masking, and batch/particle padding.
    out = particle_flow_network(x, kparams, num_classes, tile_b=8, tile_p=8)
    out = jax.block_until_ready(out)

    ref = particle_flow_network_ref(x, raw)
    assert out.shape == (B, num_classes)
    # bf16 weights/activations in the kernel (f32 accumulation) vs f32 reference
    assert jnp.allclose(out, ref, rtol=3e-2, atol=2e-2), (
        out, ref, jnp.max(jnp.abs(out - ref)))

    print("KERNEL_OK")
</pallas_src>

<mosaic_0001>
module attributes {stable_mosaic.version = 11 : i64} {
  func.func @_pfn_kernel(%arg0: i32, %arg1: i32, %arg2: memref<8x8x4xbf16, #tpu.memory_space<vmem>>, %arg3: memref<4x128xbf16, #tpu.memory_space<vmem>>, %arg4: memref<1x128xf32, #tpu.memory_space<vmem>>, %arg5: memref<128x128xbf16, #tpu.memory_space<vmem>>, %arg6: memref<1x128xf32, #tpu.memory_space<vmem>>, %arg7: memref<128x128xbf16, #tpu.memory_space<vmem>>, %arg8: memref<1x128xf32, #tpu.memory_space<vmem>>, %arg9: memref<128x128xbf16, #tpu.memory_space<vmem>>, %arg10: memref<1x128xf32, #tpu.memory_space<vmem>>, %arg11: memref<128x128xbf16, #tpu.memory_space<vmem>>, %arg12: memref<1x128xf32, #tpu.memory_space<vmem>>, %arg13: memref<128x128xbf16, #tpu.memory_space<vmem>>, %arg14: memref<1x128xf32, #tpu.memory_space<vmem>>, %arg15: memref<128x128xbf16, #tpu.memory_space<vmem>>, %arg16: memref<1x128xf32, #tpu.memory_space<vmem>>, %arg17: memref<8x128xf32, #tpu.memory_space<vmem>>, %arg18: memref<8x128xf32, #tpu.memory_space<vmem>>) attributes {dimension_semantics = [#tpu.dimension_semantics<parallel>, #tpu.dimension_semantics<arbitrary>], iteration_bounds = array<i64: 2, 3>, scalar_prefetch = 0 : i64, scratch_operands = 1 : i64, tpu.core_type = #tpu.core_type<tc>, window_params = [{transform_indices = @transform_0, window_bounds = array<i64: 8, 8, 4>}, {pipeline_mode = #tpu.pipeline_mode<synchronous>, transform_indices = @transform_1, window_bounds = array<i64: 4, 128>}, {pipeline_mode = #tpu.pipeline_mode<synchronous>, transform_indices = @transform_2, window_bounds = array<i64: 1, 128>}, {pipeline_mode = #tpu.pipeline_mode<synchronous>, transform_indices = @transform_3, window_bounds = array<i64: 128, 128>}, {pipeline_mode = #tpu.pipeline_mode<synchronous>, transform_indices = @transform_4, window_bounds = array<i64: 1, 128>}, {pipeline_mode = #tpu.pipeline_mode<synchronous>, transform_indices = @transform_5, window_bounds = array<i64: 128, 128>}, {pipeline_mode = #tpu.pipeline_mode<synchronous>, transform_indices = @transform_6, window_bounds = array<i64: 1, 128>}, {pipeline_mode = #tpu.pipeline_mode<synchronous>, transform_indices = @transform_7, window_bounds = array<i64: 128, 128>}, {pipeline_mode = #tpu.pipeline_mode<synchronous>, transform_indices = @transform_8, window_bounds = array<i64: 1, 128>}, {pipeline_mode = #tpu.pipeline_mode<synchronous>, transform_indices = @transform_9, window_bounds = array<i64: 128, 128>}, {pipeline_mode = #tpu.pipeline_mode<synchronous>, transform_indices = @transform_10, window_bounds = array<i64: 1, 128>}, {pipeline_mode = #tpu.pipeline_mode<synchronous>, transform_indices = @transform_11, window_bounds = array<i64: 128, 128>}, {pipeline_mode = #tpu.pipeline_mode<synchronous>, transform_indices = @transform_12, window_bounds = array<i64: 1, 128>}, {pipeline_mode = #tpu.pipeline_mode<synchronous>, transform_indices = @transform_13, window_bounds = array<i64: 128, 128>}, {pipeline_mode = #tpu.pipeline_mode<synchronous>, transform_indices = @transform_14, window_bounds = array<i64: 1, 128>}, {transform_indices = @transform_15, window_bounds = array<i64: 8, 128>}]} {
    %c0_i32 = arith.constant 0 : i32
    %0 = arith.cmpi eq, %arg1, %c0_i32 : i32
    %1 = arith.extui %0 : i1 to i32
    %c0_i32_0 = arith.constant 0 : i32
    %2 = arith.cmpi ne, %1, %c0_i32_0 : i32
    scf.if %2 {
      %cst_29 = arith.constant 0.000000e+00 : f32
      %46 = vector.broadcast %cst_29 : f32 to vector<8x128xf32>
      %c0_30 = arith.constant 0 : index
      %c0_31 = arith.constant 0 : index
      %47 = vector.load %arg18[%c0_30, %c0_31] : memref<8x128xf32, #tpu.memory_space<vmem>>, vector<8x128xf32>
      tpu.vector_store %arg18[%c0_30, %c0_31], %46 {strides = array<i32>} : memref<8x128xf32, #tpu.memory_space<vmem>>, vector<8x128xf32>,
    } else {
    }
    %c0 = arith.constant 0 : index
    %c0_1 = arith.constant 0 : index
    %c0_2 = arith.constant 0 : index
    %3 = vector.load %arg2[%c0, %c0_1, %c0_2] : memref<8x8x4xbf16, #tpu.memory_space<vmem>>, vector<8x8x4xbf16>
    %4 = vector.shape_cast %3 : vector<8x8x4xbf16> to vector<64x4xbf16>
    %5 = arith.extf %4 : vector<64x4xbf16> to vector<64x4xf32>
    %6 = math.absf %5 : vector<64x4xf32>
    %cst = arith.constant dense<0.000000e+00> : vector<64xf32>
    %7 = vector.multi_reduction <add>, %6, %cst [1] : vector<64x4xf32> to vector<64xf32>
    %8 = vector.shape_cast %7 : vector<64xf32> to vector<64x1xf32>
    %cst_3 = arith.constant 0.000000e+00 : f32
    %9 = vector.broadcast %cst_3 : f32 to vector<64x1xf32>
    %10 = arith.cmpf one, %8, %9 : vector<64x1xf32>
    %c0_4 = arith.constant 0 : index
    %c0_5 = arith.constant 0 : index
    %11 = vector.load %arg3[%c0_4, %c0_5] : memref<4x128xbf16, #tpu.memory_space<vmem>>, vector<4x128xbf16>
    %c0_6 = arith.constant 0 : index
    %c0_7 = arith.constant 0 : index
    %12 = vector.load %arg4[%c0_6, %c0_7] : memref<1x128xf32, #tpu.memory_space<vmem>>, vector<1x128xf32>
    %cst_8 = arith.constant dense<0.000000e+00> : vector<64x128xf32>
    %13 = tpu.matmul %4, %11, %cst_8 {dimension_numbers = #tpu.dot_dimension_numbers<[1], [0], [0], [1], [0, 0, 1, 1], [], []>} : vector<64x4xbf16>, vector<4x128xbf16>, vector<64x128xf32> -> vector<64x128xf32>
    %14 = vector.broadcast %12 : vector<1x128xf32> to vector<64x128xf32>
    %15 = arith.addf %13, %14 : vector<64x128xf32>
    %cst_9 = arith.constant 0.000000e+00 : f32
    %16 = vector.broadcast %cst_9 : f32 to vector<64x128xf32>
    %17 = arith.maximumf %15, %16 : vector<64x128xf32>
    %18 = arith.truncf %17 : vector<64x128xf32> to vector<64x128xbf16>
    %c0_10 = arith.constant 0 : index
    %c0_11 = arith.constant 0 : index
    %19 = vector.load %arg5[%c0_10, %c0_11] : memref<128x128xbf16, #tpu.memory_space<vmem>>, vector<128x128xbf16>
    %c0_12 = arith.constant 0 : index
    %c0_13 = arith.constant 0 : index
    %20 = vector.load %arg6[%c0_12, %c0_13] : memref<1x128xf32, #tpu.memory_space<vmem>>, vector<1x128xf32>
    %cst_14 = arith.constant dense<0.000000e+00> : vector<64x128xf32>
    %21 = tpu.matmul %18, %19, %cst_14 {dimension_numbers = #tpu.dot_dimension_numbers<[1], [0], [0], [1], [0, 0, 1, 1], [], []>} : vector<64x128xbf16>, vector<128x128xbf16>, vector<64x128xf32> -> vector<64x128xf32>
    %22 = vector.broadcast %20 : vector<1x128xf32> to vector<64x128xf32>
    %23 = arith.addf %21, %22 : vector<64x128xf32>
    %cst_15 = arith.constant 0.000000e+00 : f32
    %24 = vector.broadcast %cst_15 : f32 to vector<64x128xf32>
    %25 = arith.maximumf %23, %24 : vector<64x128xf32>
    %26 = arith.truncf %25 : vector<64x128xf32> to vector<64x128xbf16>
    %c0_16 = arith.constant 0 : index
    %c0_17 = arith.constant 0 : index
    %27 = vector.load %arg7[%c0_16, %c0_17] : memref<128x128xbf16, #tpu.memory_space<vmem>>, vector<128x128xbf16>
    %c0_18 = arith.constant 0 : index
    %c0_19 = arith.constant 0 : index
    %28 = vector.load %arg8[%c0_18, %c0_19] : memref<1x128xf32, #tpu.memory_space<vmem>>, vector<1x128xf32>
    %cst_20 = arith.constant dense<0.000000e+00> : vector<64x128xf32>
    %29 = tpu.matmul %26, %27, %cst_20 {dimension_numbers = #tpu.dot_dimension_numbers<[1], [0], [0], [1], [0, 0, 1, 1], [], []>} : vector<64x128xbf16>, vector<128x128xbf16>, vector<64x128xf32> -> vector<64x128xf32>
    %30 = vector.broadcast %28 : vector<1x128xf32> to vector<64x128xf32>
    %31 = arith.addf %29, %30 : vector<64x128xf32>
    %cst_21 = arith.constant 0.000000e+00 : f32
    %32 = vector.broadcast %cst_21 : f32 to vector<64x128xf32>
    %33 = arith.maximumf %31, %32 : vector<64x128xf32>
    %cst_22 = arith.constant 0.000000e+00 : f32
    %34 = vector.shape_cast %10 : vector<64x1xi1> to vector<64x1xi1>
    %35 = vector.broadcast %34 : vector<64x1xi1> to vector<64x128xi1>
    %36 = vector.broadcast %cst_22 : f32 to vector<64x128xf32>
    %37 = arith.select %35, %33, %36 : vector<64x128xi1>, vector<64x128xf32>
    %c0_23 = arith.constant 0 : index
    %c0_24 = arith.constant 0 : index
    %38 = vector.load %arg18[%c0_23, %c0_24] : memref<8x128xf32, #tpu.memory_space<vmem>>, vector<8x128xf32>
    %39 = vector.shape_cast %37 : vector<64x128xf32> to vector<8x8x128xf32>
    %cst_25 = arith.constant dense<0.000000e+00> : vector<8x128xf32>
    %40 = vector.multi_reduction <add>, %39, %cst_25 [1] : vector<8x8x128xf32> to vector<8x128xf32>
    %41 = arith.addf %38, %40 : vector<8x128xf32>
    %c0_26 = arith.constant 0 : index
    %c0_27 = arith.constant 0 : index
    %42 = vector.load %arg18[%c0_26, %c0_27] : memref<8x128xf32, #tpu.memory_space<vmem>>, vector<8x128xf32>
    tpu.vector_store %arg18[%c0_26, %c0_27], %41 {strides = array<i32>} : memref<8x128xf32, #tpu.memory_space<vmem>>, vector<8x128xf32>,
    %c2_i32 = arith.constant 2 : i32
    %43 = arith.cmpi eq, %arg1, %c2_i32 : i32
    %44 = arith.extui %43 : i1 to i32
    %c0_i32_28 = arith.constant 0 : i32
    %45 = arith.cmpi ne, %44, %c0_i32_28 : i32
    scf.if %45 {
      %c0_29 = arith.constant 0 : index
      %c0_30 = arith.constant 0 : index
      %46 = vector.load %arg18[%c0_29, %c0_30] : memref<8x128xf32, #tpu.memory_space<vmem>>, vector<8x128xf32>
      %c0_31 = arith.constant 0 : index
      %c0_32 = arith.constant 0 : index
      %47 = vector.load %arg9[%c0_31, %c0_32] : memref<128x128xbf16, #tpu.memory_space<vmem>>, vector<128x128xbf16>
      %c0_33 = arith.constant 0 : index
      %c0_34 = arith.constant 0 : index
      %48 = vector.load %arg10[%c0_33, %c0_34] : memref<1x128xf32, #tpu.memory_space<vmem>>, vector<1x128xf32>
      %49 = arith.truncf %46 : vector<8x128xf32> to vector<8x128xbf16>
      %cst_35 = arith.constant dense<0.000000e+00> : vector<8x128xf32>
      %50 = tpu.matmul %49, %47, %cst_35 {dimension_numbers = #tpu.dot_dimension_numbers<[1], [0], [0], [1], [0, 0, 1, 1], [], []>} : vector<8x128xbf16>, vector<128x128xbf16>, vector<8x128xf32> -> vector<8x128xf32>
      %51 = vector.broadcast %48 : vector<1x128xf32> to vector<8x128xf32>
      %52 = arith.addf %50, %51 : vector<8x128xf32>
      %cst_36 = arith.constant 0.000000e+00 : f32
      %53 = vector.broadcast %cst_36 : f32 to vector<8x128xf32>
      %54 = arith.maximumf %52, %53 : vector<8x128xf32>
      %c0_37 = arith.constant 0 : index
      %c0_38 = arith.constant 0 : index
      %55 = vector.load %arg11[%c0_37, %c0_38] : memref<128x128xbf16, #tpu.memory_space<vmem>>, vector<128x128xbf16>
      %c0_39 = arith.constant 0 : index
      %c0_40 = arith.constant 0 : index
      %56 = vector.load %arg12[%c0_39, %c0_40] : memref<1x128xf32, #tpu.memory_space<vmem>>, vector<1x128xf32>
      %57 = arith.truncf %54 : vector<8x128xf32> to vector<8x128xbf16>
      %cst_41 = arith.constant dense<0.000000e+00> : vector<8x128xf32>
      %58 = tpu.matmul %57, %55, %cst_41 {dimension_numbers = #tpu.dot_dimension_numbers<[1], [0], [0], [1], [0, 0, 1, 1], [], []>} : vector<8x128xbf16>, vector<128x128xbf16>, vector<8x128xf32> -> vector<8x128xf32>
      %59 = vector.broadcast %56 : vector<1x128xf32> to vector<8x128xf32>
      %60 = arith.addf %58, %59 : vector<8x128xf32>
      %cst_42 = arith.constant 0.000000e+00 : f32
      %61 = vector.broadcast %cst_42 : f32 to vector<8x128xf32>
      %62 = arith.maximumf %60, %61 : vector<8x128xf32>
      %c0_43 = arith.constant 0 : index
      %c0_44 = arith.constant 0 : index
      %63 = vector.load %arg13[%c0_43, %c0_44] : memref<128x128xbf16, #tpu.memory_space<vmem>>, vector<128x128xbf16>
      %c0_45 = arith.constant 0 : index
      %c0_46 = arith.constant 0 : index
      %64 = vector.load %arg14[%c0_45, %c0_46] : memref<1x128xf32, #tpu.memory_space<vmem>>, vector<1x128xf32>
      %65 = arith.truncf %62 : vector<8x128xf32> to vector<8x128xbf16>
      %cst_47 = arith.constant dense<0.000000e+00> : vector<8x128xf32>
      %66 = tpu.matmul %65, %63, %cst_47 {dimension_numbers = #tpu.dot_dimension_numbers<[1], [0], [0], [1], [0, 0, 1, 1], [], []>} : vector<8x128xbf16>, vector<128x128xbf16>, vector<8x128xf32> -> vector<8x128xf32>
      %67 = vector.broadcast %64 : vector<1x128xf32> to vector<8x128xf32>
      %68 = arith.addf %66, %67 : vector<8x128xf32>
      %cst_48 = arith.constant 0.000000e+00 : f32
      %69 = vector.broadcast %cst_48 : f32 to vector<8x128xf32>
      %70 = arith.maximumf %68, %69 : vector<8x128xf32>
      %c0_49 = arith.constant 0 : index
      %c0_50 = arith.constant 0 : index
      %71 = vector.load %arg15[%c0_49, %c0_50] : memref<128x128xbf16, #tpu.memory_space<vmem>>, vector<128x128xbf16>
      %c0_51 = arith.constant 0 : index
      %c0_52 = arith.constant 0 : index
      %72 = vector.load %arg16[%c0_51, %c0_52] : memref<1x128xf32, #tpu.memory_space<vmem>>, vector<1x128xf32>
      %73 = arith.truncf %70 : vector<8x128xf32> to vector<8x128xbf16>
      %cst_53 = arith.constant dense<0.000000e+00> : vector<8x128xf32>
      %74 = tpu.matmul %73, %71, %cst_53 {dimension_numbers = #tpu.dot_dimension_numbers<[1], [0], [0], [1], [0, 0, 1, 1], [], []>} : vector<8x128xbf16>, vector<128x128xbf16>, vector<8x128xf32> -> vector<8x128xf32>
      %75 = vector.broadcast %72 : vector<1x128xf32> to vector<8x128xf32>
      %76 = arith.addf %74, %75 : vector<8x128xf32>
      %c0_54 = arith.constant 0 : index
      %c0_55 = arith.constant 0 : index
      %77 = vector.load %arg17[%c0_54, %c0_55] : memref<8x128xf32, #tpu.memory_space<vmem>>, vector<8x128xf32>
      tpu.vector_store %arg17[%c0_54, %c0_55], %76 {strides = array<i32>} : memref<8x128xf32, #tpu.memory_space<vmem>>, vector<8x128xf32>,
    } else {
    }
    return
  }
  func.func @transform_0(%arg0: i32, %arg1: i32) -> (i32, i32, i32) {
    %c0_i32 = arith.constant 0 : i32
    %c0_i32_0 = arith.constant 0 : i32
    return %arg0, %arg1, %c0_i32 : i32, i32, i32
  }
  func.func @transform_1(%arg0: i32, %arg1: i32) -> (i32, i32) {
    %c0_i32 = arith.constant 0 : i32
    %c0_i32_0 = arith.constant 0 : i32
    %c0_i32_1 = arith.constant 0 : i32
    return %c0_i32, %c0_i32_0 : i32, i32
  }
  func.func @transform_2(%arg0: i32, %arg1: i32) -> (i32, i32) {
    %c0_i32 = arith.constant 0 : i32
    %c0_i32_0 = arith.constant 0 : i32
    %c0_i32_1 = arith.constant 0 : i32
    return %c0_i32, %c0_i32_0 : i32, i32
  }
  func.func @transform_3(%arg0: i32, %arg1: i32) -> (i32, i32) {
    %c0_i32 = arith.constant 0 : i32
    %c0_i32_0 = arith.constant 0 : i32
    %c0_i32_1 = arith.constant 0 : i32
    return %c0_i32, %c0_i32_0 : i32, i32
  }
  func.func @transform_4(%arg0: i32, %arg1: i32) -> (i32, i32) {
    %c0_i32 = arith.constant 0 : i32
    %c0_i32_0 = arith.constant 0 : i32
    %c0_i32_1 = arith.constant 0 : i32
    return %c0_i32, %c0_i32_0 : i32, i32
  }
  func.func @transform_5(%arg0: i32, %arg1: i32) -> (i32, i32) {
    %c0_i32 = arith.constant 0 : i32
    %c0_i32_0 = arith.constant 0 : i32
    %c0_i32_1 = arith.constant 0 : i32
    return %c0_i32, %c0_i32_0 : i32, i32
  }
  func.func @transform_6(%arg0: i32, %arg1: i32) -> (i32, i32) {
    %c0_i32 = arith.constant 0 : i32
    %c0_i32_0 = arith.constant 0 : i32
    %c0_i32_1 = arith.constant 0 : i32
    return %c0_i32, %c0_i32_0 : i32, i32
  }
  func.func @transform_7(%arg0: i32, %arg1: i32) -> (i32, i32) {
    %c0_i32 = arith.constant 0 : i32
    %c0_i32_0 = arith.constant 0 : i32
    %c0_i32_1 = arith.constant 0 : i32
    return %c0_i32, %c0_i32_0 : i32, i32
  }
  func.func @transform_8(%arg0: i32, %arg1: i32) -> (i32, i32) {
    %c0_i32 = arith.constant 0 : i32
    %c0_i32_0 = arith.constant 0 : i32
    %c0_i32_1 = arith.constant 0 : i32
    return %c0_i32, %c0_i32_0 : i32, i32
  }
  func.func @transform_9(%arg0: i32, %arg1: i32) -> (i32, i32) {
    %c0_i32 = arith.constant 0 : i32
    %c0_i32_0 = arith.constant 0 : i32
    %c0_i32_1 = arith.constant 0 : i32
    return %c0_i32, %c0_i32_0 : i32, i32
  }
  func.func @transform_10(%arg0: i32, %arg1: i32) -> (i32, i32) {
    %c0_i32 = arith.constant 0 : i32
    %c0_i32_0 = arith.constant 0 : i32
    %c0_i32_1 = arith.constant 0 : i32
    return %c0_i32, %c0_i32_0 : i32, i32
  }
  func.func @transform_11(%arg0: i32, %arg1: i32) -> (i32, i32) {
    %c0_i32 = arith.constant 0 : i32
    %c0_i32_0 = arith.constant 0 : i32
    %c0_i32_1 = arith.constant 0 : i32
    return %c0_i32, %c0_i32_0 : i32, i32
  }
  func.func @transform_12(%arg0: i32, %arg1: i32) -> (i32, i32) {
    %c0_i32 = arith.constant 0 : i32
    %c0_i32_0 = arith.constant 0 : i32
    %c0_i32_1 = arith.constant 0 : i32
    return %c0_i32, %c0_i32_0 : i32, i32
  }
  func.func @transform_13(%arg0: i32, %arg1: i32) -> (i32, i32) {
    %c0_i32 = arith.constant 0 : i32
    %c0_i32_0 = arith.constant 0 : i32
    %c0_i32_1 = arith.constant 0 : i32
    return %c0_i32, %c0_i32_0 : i32, i32
  }
  func.func @transform_14(%arg0: i32, %arg1: i32) -> (i32, i32) {
    %c0_i32 = arith.constant 0 : i32
    %c0_i32_0 = arith.constant 0 : i32
    %c0_i32_1 = arith.constant 0 : i32
    return %c0_i32, %c0_i32_0 : i32, i32
  }
  func.func @transform_15(%arg0: i32, %arg1: i32) -> (i32, i32) {
    %c0_i32 = arith.constant 0 : i32
    %c0_i32_0 = arith.constant 0 : i32
    return %arg0, %c0_i32 : i32, i32
  }
}

</mosaic_0001>

<bundles_post_ra>
// kernel: tpu_custom_call.1
= control target key start
LH: loop header
LB: loop body
LE: loop exit
PB: predicated region body
PF: predicated region fallthrough
CT: control target
= control target key end

     0   :  { %s2602_s0 = inlined_call_operand.vmem [shape: bf16[16,24,4], index: 0, kind: input, shape index: {}]   ;;  %s2603_s1 = inlined_call_operand.vmem [shape: bf16[4,128], index: 1, kind: input, shape index: {}]   ;;  %s2604_s2 = inlined_call_operand.vmem [shape: f32[1,128], index: 2, kind: input, shape index: {}]   ;;  %s2605_s3 = inlined_call_operand.vmem [shape: bf16[128,128], index: 3, kind: input, shape index: {}]   ;;  %s2606_s4 = inlined_call_operand.vmem [shape: f32[1,128], index: 4, kind: input, shape index: {}]   ;;  %s2607_s5 = inlined_call_operand.vmem [shape: bf16[128,128], index: 5, kind: input, shape index: {}]   ;;  %s2608_s6 = inlined_call_operand.vmem [shape: f32[1,128], index: 6, kind: input, shape index: {}]   ;;  %s2609_s7 = inlined_call_operand.vmem [shape: bf16[128,128], index: 7, kind: input, shape index: {}]   ;;  %s2610_s8 = inlined_call_operand.vmem [shape: f32[1,128], index: 8, kind: input, shape index: {}]   ;;  %s2611_s9 = inlined_call_operand.hbm [shape: bf16[128,128], index: 9, kind: input, shape index: {}]   ;;  %s2612_s10 = inlined_call_operand.vmem [shape: f32[1,128], index: 10, kind: input, shape index: {}]   ;;  %s2613_s11 = inlined_call_operand.hbm [shape: bf16[128,128], index: 11, kind: input, shape index: {}]   ;;  %s2614_s12 = inlined_call_operand.vmem [shape: f32[1,128], index: 12, kind: input, shape index: {}]   ;;  %s2615_s13 = inlined_call_operand.hbm [shape: bf16[128,128], index: 13, kind: input, shape index: {}]   ;;  %s2616_s14 = inlined_call_operand.vmem [shape: f32[1,128], index: 14, kind: input, shape index: {}]   ;;  %s2617_s15 = inlined_call_operand.hbm [shape: f32[16,128], index: 15, kind: output, shape index: {}]  }
   0x1   :  { %2628 = sst [smem:[#allocation23_spill]] %s2606_s4 }
   0x2   :  { %2629 = sst [smem:[#allocation24_spill]] %s2607_s5 }
   0x3   :  { %2630 = sst [smem:[#allocation25_spill]] %s2608_s6 }
   0x4   :  { %2631 = sst [smem:[#allocation26_spill]] %s2609_s7 }
   0x5   :  { %2632 = sst [smem:[#allocation27_spill]] %s2610_s8 }
   0x6   :  { %2633 = sst [smem:[#allocation28_spill]] %s2612_s10 }
   0x7   :  { %2634 = sst [smem:[#allocation29_spill]] %s2613_s11 }
   0x8   :  { %2635 = sst [smem:[#allocation30_spill]] %s2614_s12 }
   0x9   :  { %2636 = sst [smem:[#allocation31_spill]] %s2616_s14 }
   0xa   :  { %2637 = sst [smem:[#allocation32_spill]] %s2617_s15 }
   0xb   :  { %20 = vsyncpa [#allocation5], 0 }
   0xc   :  { %21 = vsyncpa [#allocation8], 0 }
   0xd   :  { %22 = vsyncpa [#allocation6], 0 }
   0xe   :  { %24 = vsyncpa [#allocation6 + $0x1], 0  ;;  %s2279_s18 = smov 0   ;;  %s2281_s19 = smov 0  }
   0xf   :  { %s2283_s20 = smov 0   ;;  %s2285_s21 = smov 0  }
  0x10   :  { %s2287_s22 = smov 0   ;;  %s2289_s23 = smov 0  }
  0x11   :  { %s2291_s24 = smov 0   ;;  %s2293_s25 = smov 0  }
  0x12   :  { %s2295_s26 = smov 0   ;;  %s2297_s27 = smov 0  }
  0x13 LB: > { %2638 = sst [smem:[#allocation14_spill]] %s2155_s18  ;;  %s1551_s28 = sadd.s32 4294967295, %s2191_s27   ;;  %s2191_s27 = sphi %s2297_s27, %s30_s27   ;;  %s2187_s26 = sphi %s2295_s26, %s2679_s26   ;;  %s2183_s25 = sphi %s2293_s25, %s2678_s25   ;;  %s2179_s24 = sphi %s2291_s24, %s2677_s24   ;;  %s2175_s23 = sphi %s2289_s23, %s2676_s23   ;;  %s2171_s22 = sphi %s2287_s22, %s2675_s22   ;;  %s2167_s21 = sphi %s2285_s21, %s2674_s21   ;;  %s2163_s20 = sphi %s2283_s20, %s2668_s20   ;;  %s2159_s19 = sphi %s2281_s19, %s2673_s19   ;;  %s2155_s18 = sphi %s2279_s18, %s2672_s18  }
  0x14   : > { %2639 = sst [smem:[#allocation15_spill]] %s2163_s20  ;;  %s1552_s29 = sadd.s32 4294967294, %s2191_s27  }
  0x15   : > { %2640 = sst [smem:[#allocation16_spill]] %s2179_s24  ;;  %s39_s30 = sadd.s32 1, %s2183_s25 }
  0x16   : > { %s42_s16 = sadd.s32 1, %s2187_s26  ;;  %p40_p0 = scmp.ge.s32.totalorder %s39_s30, 3 }
  0x17   : > { %s51_s17 = sadd.s32 1, %s2171_s22  ;;  %p58_p1 = scmp.ne.s32.totalorder %s2171_s22, %s2167_s21 }
  0x18   : > { %p59_p2 = scmp.eq.s32.totalorder %s2191_s27, 0  ;;  %s2681_s30 = smov (%p40_p0, %s39_s30), 0 }
  0x19   : > { %2641 = sst [smem:[#allocation17_spill]] %s2681_s30  ;;  %s2683_s16 = smov (!%p40_p0, %s42_s16), %s2187_s26 }
  0x1a   : > { %s47_s15 = ssub.s32 %s2183_s25, %s2681_s30  ;;  %p2342_p3 = por %p59_p2, %p58_p1 }
  0x1b   : > { %p44_p4 = scmp.ge.s32.totalorder %s2683_s16, 2  ;;  %s371_s14 = sadd.s32 1, %s2163_s20 }
  0x1c   : > { %p381_p5 = scmp.ne.s32.totalorder %s2163_s20, %s2159_s19  ;;  %p382_p6 = scmp.eq.s32.totalorder %s1551_s28, 5 }
  0x1d   : > { %s2685_s16 = smov (%p44_p4, %s2683_s16), 0  ;;  %p387_p8 = scmp.ne.s32.totalorder %s2159_s19, %s2155_s18 }
  0x1e   : > { %2643 = sst [smem:[#allocation18_spill]] %s2685_s16  ;;  %p2351_p7 = por %p382_p6, %p381_p5 }
  0x1f   : > { %s46_s30 = ssub.s32 %s2187_s26, %s2685_s16  ;;  %p388_p9 = scmp.eq.s32.totalorder %s1552_s29, 5 }
  0x20   : > { %s2644_s12 = scalar_select %p2351_p7, 1, 0 }
  0x21   : > { %s48_s10 = sor.u32 %s47_s15, %s46_s30  ;;  %p369_p10 = scmp.eq.s32.totalorder %s46_s30, 0 }
  0x22   : > { %2645 = sst [smem:[#allocation19_spill]] %s2644_s12  ;;  %p49_p11 = scmp.eq.s32.totalorder %s48_s10, 0 }
  0x23   : > { %p2359_p12 = por %p388_p9, %p387_p8  ;;  %p1553_p13 = scmp.ge.s32.totalorder %s2191_s27, 1 }
  0x24   : > { %s2364_s7 = scalar_select %p369_p10, %s2163_s20, %s371_s14  }
  0x25   : > { %s2646_s8 = scalar_select %p2359_p12, 1, 0 }
  0x26   : > { %2648 = sst [smem:[#allocation21_spill]] %s2364_s7  ;;  %p395_p0 = scmp.lt.s32.totalorder %s2191_s27, 7 }
  0x27   : > { %2647 = sst [smem:[#allocation20_spill]] %s2646_s8  ;;  %p2371_p1 = scmp.eq.s32.totalorder %s1551_s28, 0 }
  0x28   : > { %s2367_s6 = scalar_select %p49_p11, %s2171_s22, %s51_s17  }
  0x29   : > { %p2375_p2 = pnand %p1553_p13, %p395_p0  ;;  %s2652_s11 = sld [smem:[#allocation29_spill]] }
  0x2a   : > { %2649 = sst [smem:[#allocation22_spill]] %s2367_s6  ;;  %s2193_s28 = smov [#allocation7]  }
  0x2b   : > { %p1869_p4 = pneg %p2375_p2  ;;  %s449_s17 = sshll.u32 %s2193_s28, 4  ;;  %s450_s17 = int_to_ptr.vmem [resolvable:$true] %s449_s17 }
  0x2c   : > { %s2194_s16 = smov 64   ;;  %s2195_s6 = smov 4  }
  0x2d   : > { %p2386_p5 = pnand %p2371_p1, %p1869_p4  ;;  %s2196_s7 = smov [#allocation4]  }
  0x2e   : > { %s432_s20 = sshll.u32 %s2196_s7, 4  ;;  %s464_s12 = sshll.u32 %s2615_s13, 4  ;;  %s433_s20 = int_to_ptr.vmem [resolvable:$true] %s432_s20  ;;  %s465_s12 = int_to_ptr.hbm [resolvable:$true] %s464_s12 }
  0x2f   : > { %s447_s30 = sshll.u32 %s2652_s11, 4  ;;  %s430_s11 = sshll.u32 %s2611_s9, 4  ;;  %s448_s30 = int_to_ptr.hbm [resolvable:$true] %s447_s30  ;;  %s431_s11 = int_to_ptr.hbm [resolvable:$true] %s430_s11 }
  0x30   : > { %1875 = dma.hbm_to_vmem [thread:$0]  (!%p2386_p5), %s448_s30, 1024, %s450_s17, [#allocation8], %s2194_s16, %s2194_s16, %s2195_s6  }
  0x31   : > { %1872 = dma.hbm_to_vmem [thread:$0]  (!%p2386_p5), %s431_s11, 1024, %s433_s20, [#allocation5], %s2194_s16, %s2194_s16, %s2195_s6  }
  0x32   : > { %s2197_s28 = smov [#allocation9]   ;;  %p1557_p6 = scmp.ge.s32.totalorder %s2191_s27, 6 }
  0x33   : > { %s466_s5 = sshll.u32 %s2197_s28, 4  ;;  %s467_s5 = int_to_ptr.vmem [resolvable:$true] %s466_s5 }
  0x34   : > { %1878 = dma.hbm_to_vmem [thread:$0]  (!%p2386_p5), %s465_s12, 1024, %s467_s5, [#allocation8], %s2194_s16, %s2194_s16, %s2195_s6  }
  0x35   : > { %479 = sbr.rel (%p1557_p6) target bundleno = 73 (0x49), region = 72 }
  0x3a   : > { %482 = sbr.rel (!%p2342_p3) target bundleno = 73 (0x49), region = 76  ;;  %s484_s7 = sand.u32 (%p2342_p3), 1, %s2171_s22  }
  0x3b   : > { %s1854_s8 = smul.u32 (%p2342_p3), 24, %s2187_s26  ;;  %s1558_s18 = sshll.u32 (%p2342_p3), %s484_s7, 5 }
  0x3c   : > { %s486_s5 = scalar_lea.vmem (%p2342_p3), [#allocation3], %s1558_s18 }
  0x3d   : > { %s489_s30 = sadd.s32 (%p2342_p3), %s2183_s25, %s1854_s8 }
  0x3e   : > { %s1561_s11 = sshll.u32 (%p2342_p3), %s489_s30, 2 }
  0x3f   : > { %s491_s10 = scalar_lea.vmem %s2602_s0, %s1561_s11 }
  0x40   : > { %v508_v0 = vld [vmem:[%s491_s10] sm:$0xf]  ;;  %v510_v1 = vld [vmem:[%s491_s10 + $0xc] sm:$0xf]  ;;  %v512_v2 = vld [vmem:[%s491_s10 + $0x18] sm:$0xf] }
  0x41   : > { %509 = vst [vmem:[%s486_s5] sm:$0xf] %v508_v0  ;;  %v514_v3 = vld [vmem:[%s491_s10 + $0x24] sm:$0xf]  ;;  %v516_v4 = vld [vmem:[%s491_s10 + $0x30] sm:$0xf] }
  0x42   : > { %511 = vst [vmem:[%s486_s5 + $0x4] sm:$0xf] %v510_v1  ;;  %v518_v5 = vld [vmem:[%s491_s10 + $0x3c] sm:$0xf]  ;;  %v520_v6 = vld [vmem:[%s491_s10 + $0x48] sm:$0xf] }
  0x43   : > { %513 = vst [vmem:[%s486_s5 + $0x8] sm:$0xf] %v512_v2  ;;  %v522_v7 = vld [vmem:[%s491_s10 + $0x54] sm:$0xf] }
  0x44   : > { %515 = vst [vmem:[%s486_s5 + $0xc] sm:$0xf] %v514_v3 }
  0x45   : > { %517 = vst [vmem:[%s486_s5 + $0x10] sm:$0xf] %v516_v4 }
  0x46   : > { %519 = vst [vmem:[%s486_s5 + $0x14] sm:$0xf] %v518_v5 }
  0x47   : > { %521 = vst [vmem:[%s486_s5 + $0x18] sm:$0xf] %v520_v6 }
  0x48   : > { %523 = vst [vmem:[%s486_s5 + $0x1c] sm:$0xf] %v522_v7 }
  0x49 PF: > { %566 = sbr.rel (%p2375_p2) target bundleno = 1185 (0x4a1), region = 117  ;;  %s569_s6 = sand.u32 (!%p2375_p2), 1, %s2167_s21  }
  0x4a   : > { %s1563_s12 = sshll.u32 (!%p2375_p2), %s569_s6, 5 }
  0x4b   : > { %s2414_s24 = scalar_lea.vmem (!%p2375_p2), [#allocation3], %s1563_s12 }
  0x4e   : > { %2142 = dma.done.wait (%p2371_p1), [#allocation5], 1024  }
  0x4f   : > { %2144 = vsyncadd (%p2371_p1), [#allocation5], 4294966272 }
  0x50   : > { %2146 = dma.done.wait (%p2371_p1), [#allocation8], 2048  }
  0x51   : > { %2148 = vsyncadd (%p2371_p1), [#allocation8], 4294965248  ;;  %s628_s16 = sand.u32 1, %s2159_s19   ;;  %p1568_p3 = scmp.ne.s32.totalorder %s2175_s23, 0 }
  0x52   : > { %s2427_s29 = sshll.u32 %s628_s16, 3 }
  0x53   : > { %s630_s21 = scalar_lea.vmem [#allocation10], %s2427_s29  ;;  %636 = sbr.rel (%p1568_p3) target bundleno = 90 (0x5a), region = 137 }
  0x58   : > { %v2198_v8 = vmov 0.0  }
  0x59   : > { %637 = vst [vmem:[#allocation2] sm:$0xff] %v2198_v8 }
  0x5a PF: > { %v695_v9 = vld [vmem:[%s2603_s1] sm:$0x3]  ;;  %vm732_vm0 = vcmask 1041408   ;;  %v1786_v11 = vld [vmem:[%s2414_s24] sm:$0xff]  ;;  %vm662_vm1 = vcmask 31744   ;;  %v1787_v12 = vld [vmem:[%s2414_s24 + $0x8] sm:$0xff] }
  0x5b   : > { %v734_v10 = vsel %vm732_vm0, %v695_v9, 0  ;;  %v1797_v13 = vld [vmem:[%s2605_s3 + $0x38] sm:$0xff]  ;;  %v1796_v14 = vld [vmem:[%s2605_s3 + $0x30] sm:$0xff]  ;;  %v1795_v15 = vld [vmem:[%s2605_s3 + $0x28] sm:$0xff]  ;;  %s2654_s30 = sld [smem:[#allocation24_spill]]  ;;  %vm1072_vm10 = vcmask 1041409  }
  0x5c   : > { %743 = vmatpush.bf16.msra.mxu0 %v734_v10  ;;  %845 = vmatpush.bf16.msra.mxu1 %v1797_v13  ;;  %v1794_v16 = vld [vmem:[%s2605_s3 + $0x20] sm:$0xff]  ;;  %v1788_v17 = vld [vmem:[%s2414_s24 + $0x10] sm:$0xff]  ;;  %v1792_v20 = vld [vmem:[%s2605_s3 + $0x10] sm:$0xff]  ;;  %s2655_s17 = sld [smem:[#allocation23_spill]]  ;;  %vm1074_vm11 = vcmask 1042434   ;;  %vm1076_vm12 = vcmask 1043459  }
  0x5d   : > { %1838 = vmatpush.bf16.msra.mxu3 %v1797_v13  ;;  %v1789_v18 = vld [vmem:[%s2414_s24 + $0x18] sm:$0xff]  ;;  %v1793_v19 = vld [vmem:[%s2605_s3 + $0x18] sm:$0xff]  ;;  %v1791_v21 = vld [vmem:[%s2605_s3 + $0x8] sm:$0xff]  ;;  %s2656_s5 = sld [smem:[#allocation25_spill]]  ;;  %vm1078_vm13 = vcmask 1044484   ;;  %vm1080_vm14 = vcmask 1045509  }
  0x5e   : > { %v1790_v22 = vld [vmem:[%s2605_s3] sm:$0xff]  ;;  %v638_v60 = vld [vmem:[%s2414_s24] sm:$0xff]   ;;  %vm1082_vm15 = vcmask 1046534   ;;  %vm1084_vm0 = vcmask 1047559   ;;  %p1653_p8 = scmp.ne.s32.totalorder %s2175_s23, 2 }
  0x5f   : > { %1585 = vmatmul.msk.bf16.vlgmr.msra.gmra.mxu0 %vm662_vm1, %v1786_v11  ;;  %v1976_v24 = vld [vmem:[%s2604_s2] ss:$0 sm:$0xff]  ;;  %v646_v61 = vunpack.c.l.bf16 %v638_v60  ;;  %v647_v0 = vunpack.c.h.bf16 %v638_v60  ;;  %v640_v11 = vld [vmem:[%s2414_s24 + $0x8] sm:$0xff]   ;;  %s2657_s14 = sld [smem:[#allocation26_spill]] (!%p1653_p8) }
  0x60   : > { %846 = vmatpush.bf16.msra.mxu1 %v1796_v14  ;;  %s2658_s4 = sld [smem:[#allocation27_spill]] (!%p1653_p8) }
  0x61   : > { %1839 = vmatpush.bf16.msra.mxu3 %v1796_v14  ;;  %v1805_v38 = vld [vmem:[%s2654_s30 + $0x38] sm:$0xff]  ;;  %v1804_v40 = vld [vmem:[%s2654_s30 + $0x30] sm:$0xff]  ;;  %v1803_v41 = vld [vmem:[%s2654_s30 + $0x28] sm:$0xff]  ;;  %v654_v62 = vand.u32 2147483647, %v646_v61  ;;  %s2659_s23 = sld [smem:[#allocation28_spill]] (!%p1653_p8) }
  0x62   : > { %1846 = vmatpush.bf16.msra.mxu2 %v1805_v38  ;;  %v1802_v45 = vld [vmem:[%s2654_s30 + $0x20] sm:$0xff]  ;;  %v1801_v56 = vld [vmem:[%s2654_s30 + $0x18] sm:$0xff]  ;;  %v1800_v57 = vld [vmem:[%s2654_s30 + $0x10] sm:$0xff]  ;;  %v655_v2 = vand.u32 2147483647, %v647_v0  ;;  %s2660_s11 = sld [smem:[#allocation30_spill]] (!%p1653_p8) }
  0x63   : > { %v1799_v58 = vld [vmem:[%s2654_s30 + $0x8] sm:$0xff]  ;;  %v1798_v59 = vld [vmem:[%s2654_s30] sm:$0xff]  ;;  %v663_v63 = vsel %vm662_vm1, %v654_v62, 0.0 }
  0x64   : > { %847 = vmatpush.bf16.msra.mxu1 %v1795_v15  ;;  %664 = vadd.xlane.f32.xlu0 %v663_v63  ;;  %v1977_v3 = vld [vmem:[%s2655_s17] ss:$0 sm:$0xff]  ;;  %v666_v4 = vsel %vm662_vm1, %v655_v2, 0.0 }
  0x65   : > { %1840 = vmatpush.bf16.msra.mxu3 %v1795_v15  ;;  %v1978_v60 = vld [vmem:[%s2656_s5] ss:$0 sm:$0xff] }
  0x66   : > { %1847 = vmatpush.bf16.msra.mxu2 %v1804_v40 }
  0x68   : > { %848 = vmatpush.bf16.msra.mxu1 %v1794_v16 }
  0x69   : > { %1841 = vmatpush.bf16.msra.mxu3 %v1794_v16  ;;  %v649_v16 = vunpack.c.h.bf16 %v640_v11 }
  0x6a   : > { %1848 = vmatpush.bf16.msra.mxu2 %v1803_v41 }
  0x6c   : > { %849 = vmatpush.bf16.msra.mxu1 %v1793_v19  ;;  %667 = vadd.xlane.f32.xlu0 %v666_v4 }
  0x6d   : > { %1842 = vmatpush.bf16.msra.mxu3 %v1793_v19 }
  0x6e   : > { %1849 = vmatpush.bf16.msra.mxu2 %v1802_v45 }
  0x6f   : > { %1586 = vmatmul.msk.bf16.gmra.mxu0 %vm662_vm1, %v1787_v12  ;;  %v648_v12 = vunpack.c.l.bf16 %v640_v11 }
  0x70   : > { %850 = vmatpush.bf16.msra.mxu1 %v1792_v20 }
  0x71   : > { %1843 = vmatpush.bf16.msra.mxu3 %v1792_v20  ;;  %v656_v13 = vand.u32 2147483647, %v648_v12 }
  0x72   : > { %1850 = vmatpush.bf16.msra.mxu2 %v1801_v56 }
  0x73   : > { %v669_v15 = vsel %vm662_vm1, %v656_v13, 0.0 }
  0x74   : > { %851 = vmatpush.bf16.msra.mxu1 %v1791_v21  ;;  %670 = vadd.xlane.f32.xlu1 %v669_v15 }
  0x75   : > { %1844 = vmatpush.bf16.msra.mxu3 %v1791_v21 }
  0x76   : > { %1851 = vmatpush.bf16.msra.mxu2 %v1800_v57 }
  0x78   : > { %852 = vmatpush.bf16.msra.mxu1 %v1790_v22 }
  0x79   : > { %1845 = vmatpush.bf16.msra.mxu3 %v1790_v22 }
  0x7a   : > { %1852 = vmatpush.bf16.msra.mxu2 %v1799_v58 }
  0x7c   : > { %954 = vmatpush.bf16.msrb.mxu1 %v1805_v38 }
  0x7e   : > { %1853 = vmatpush.bf16.msra.mxu2 %v1798_v59 }
  0x7f   : > { %1587 = vmatmul.msk.bf16.gmra.mxu0 %vm662_vm1, %v1788_v17 }
  0x80   : > { %955 = vmatpush.bf16.msrb.mxu1 %v1804_v40 }
  0x84   : > { %956 = vmatpush.bf16.msrb.mxu1 %v1803_v41 }
  0x88   : > { %957 = vmatpush.bf16.msrb.mxu1 %v1802_v45 }
  0x8c   : > { %958 = vmatpush.bf16.msrb.mxu1 %v1801_v56 }
  0x8f   : > { %1588 = vmatmul.msk.bf16.gmra.mxu0 %vm662_vm1, %v1789_v18  ;;  %v657_v18 = vand.u32 2147483647, %v649_v16 }
  0x90   : > { %959 = vmatpush.bf16.msrb.mxu1 %v1800_v57 }
  0x91   : > { %v672_v21 = vsel %vm662_vm1, %v657_v18, 0.0 }
  0x92   : > { %673 = vadd.xlane.f32.xlu1 %v672_v21 }
  0x94   : > { %960 = vmatpush.bf16.msrb.mxu1 %v1799_v58 }
  0x98   : > { %961 = vmatpush.bf16.msrb.mxu1 %v1798_v59 }
  0xd7   : > { %v665_v56 = vpop.xlane.xlu0 %664 }
  0xd8   : > { %vm687_vm4 = vcmp.ne.f32.partialorder %v665_v56, 0.0 }
  0xdc   : > { %v745_v23 = vpop.f32.mrf.mxu0 }
  0xdd   : > { %v746_v25 = vadd.f32 %v1976_v24, %v745_v23 }
  0xdf   : > { %v765_v28 = vmax.f32 %v746_v25, 0.0 }
  0xe4   : > { %v747_v26 = vpop.f32.mrf.mxu0 }
  0xe5   : > { %v748_v27 = vadd.f32 %v1976_v24, %v747_v26 }
  0xe7   : > { %v766_v29 = vmax.f32 %v748_v27, 0.0  ;;  %v671_v57 = vpop.xlane.xlu1 %670 }
  0xe8   : > { %vm689_vm3 = vcmp.ne.f32.partialorder %v671_v57, 0.0 }
  0xe9   : > { %v773_v30 = vpack.c.bf16 %v766_v29, %v765_v28  ;;  %v644_v29 = vld [vmem:[%s2414_s24 + $0x18] sm:$0xff]  }
  0xeb   : > { %853 = vmatmul.bf16.vlgmr.msra.gmra.mxu1 %v773_v30 }
  0xec   : > { %v750_v31 = vpop.f32.mrf.mxu0 }
  0xed   : > { %v751_v32 = vadd.f32 %v1976_v24, %v750_v31  ;;  %v652_v31 = vunpack.c.l.bf16 %v644_v29 }
  0xef   : > { %v767_v35 = vmax.f32 %v751_v32, 0.0  ;;  %v653_v32 = vunpack.c.h.bf16 %v644_v29 }
  0xf4   : > { %v752_v33 = vpop.f32.mrf.mxu0 }
  0xf5   : > { %v753_v34 = vadd.f32 %v1976_v24, %v752_v33 }
  0xf7   : > { %v768_v36 = vmax.f32 %v753_v34, 0.0  ;;  %v660_v34 = vand.u32 2147483647, %v652_v31 }
  0xf9   : > { %v774_v37 = vpack.c.bf16 %v768_v36, %v767_v35  ;;  %v661_v35 = vand.u32 2147483647, %v653_v32 }
  0xfb   : > { %858 = vmatmul.bf16.vlgmr.msra.gmra.mxu3 %v774_v37  ;;  %v681_v37 = vsel %vm662_vm1, %v660_v34, 0.0  ;;  %v684_v38 = vsel %vm662_vm1, %v661_v35, 0.0 }
  0xfc   : > { %v755_v39 = vpop.f32.mrf.mxu0  ;;  %682 = vadd.xlane.f32.xlu0 %v681_v37  ;;  %685 = vadd.xlane.f32.xlu1 %v684_v38 }
  0xfd   : > { %v756_v42 = vadd.f32 %v1976_v24, %v755_v39 }
  0xff   : > { %v769_v46 = vmax.f32 %v756_v42, 0.0 }
 0x104   : > { %v757_v43 = vpop.f32.mrf.mxu0 }
 0x105   : > { %v758_v44 = vadd.f32 %v1976_v24, %v757_v43 }
 0x107   : > { %v770_v47 = vmax.f32 %v758_v44, 0.0 }
 0x109   : > { %v775_v48 = vpack.c.bf16 %v770_v47, %v769_v46 }
 0x10b   : > { %863 = vmatmul.bf16.gmra.mxu3 %v775_v48 }
 0x10c   : > { %v760_v49 = vpop.f32.mrf.mxu0 }
 0x10d   : > { %v761_v50 = vadd.f32 %v1976_v24, %v760_v49 }
 0x10f   : > { %v771_v53 = vmax.f32 %v761_v50, 0.0 }
 0x114   : > { %v762_v51 = vpop.f32.mrf.mxu0 }
 0x115   : > { %v763_v52 = vadd.f32 %v1976_v24, %v762_v51  ;;  %v642_v24 = vld [vmem:[%s2414_s24 + $0x10] sm:$0xff]   ;;  %s2661_s24 = sld [smem:[#allocation31_spill]] (!%p1653_p8) }
 0x116   : > { %v650_v26 = vunpack.c.l.bf16 %v642_v24  ;;  %v651_v28 = vunpack.c.h.bf16 %v642_v24 }
 0x117   : > { %v772_v54 = vmax.f32 %v763_v52, 0.0 }
 0x118   : > { %v658_v27 = vand.u32 2147483647, %v650_v26  ;;  %v659_v36 = vand.u32 2147483647, %v651_v28 }
 0x119   : > { %v776_v55 = vpack.c.bf16 %v772_v54, %v771_v53 }
 0x11a   : > { %v675_v33 = vsel %vm662_vm1, %v658_v27, 0.0  ;;  %v678_v40 = vsel %vm662_vm1, %v659_v36, 0.0 }
 0x11b   : > { %868 = vmatmul.bf16.gmra.mxu3 %v776_v55  ;;  %676 = vadd.xlane.f32.xlu2 %v675_v33 }
 0x123   : > { %679 = vadd.xlane.f32.xlu2 %v678_v40 }
 0x168   : > { %v854_v1 = vpop.f32.mrf.mxu1 }
 0x169   : > { %v855_v5 = vadd.f32 %v1977_v3, %v854_v1  ;;  %v668_v1 = vpop.xlane.xlu0 %667 }
 0x16a   : > { %vm688_vm2 = vcmp.ne.f32.partialorder %v668_v1, 0.0 }
 0x16b   : > { %v874_v8 = vmax.f32 %v855_v5, 0.0  ;;  %v674_v5 = vpop.xlane.xlu1 %673 }
 0x16c   : > { %vm690_vm5 = vcmp.ne.f32.partialorder %v674_v5, 0.0 }
 0x170   : > { %v856_v6 = vpop.f32.mrf.mxu1 }
 0x171   : > { %v857_v7 = vadd.f32 %v1977_v3, %v856_v6 }
 0x173   : > { %v875_v9 = vmax.f32 %v857_v7, 0.0 }
 0x175   : > { %v882_v10 = vpack.c.bf16 %v875_v9, %v874_v8 }
 0x177   : > { %962 = vmatmul.bf16.vlgmr.msrb.gmra.mxu1 %v882_v10 }
 0x17e   : > { %v859_v14 = vpop.f32.mrf.mxu3 }
 0x17f   : > { %v860_v17 = vadd.f32 %v1977_v3, %v859_v14 }
 0x181   : > { %v876_v22 = vmax.f32 %v860_v17, 0.0 }
 0x186   : > { %v861_v19 = vpop.f32.mrf.mxu3 }
 0x187   : > { %v862_v20 = vadd.f32 %v1977_v3, %v861_v19 }
 0x189   : > { %v877_v23 = vmax.f32 %v862_v20, 0.0 }
 0x18b   : > { %v883_v25 = vpack.c.bf16 %v877_v23, %v876_v22 }
 0x18d   : > { %967 = vmatmul.bf16.vlgmr.msra.gmra.mxu2 %v883_v25  ;;  %v683_v25 = vpop.xlane.xlu0 %682 }
 0x18e   : > { %v864_v30 = vpop.f32.mrf.mxu3  ;;  %v677_v58 = vpop.xlane.xlu2 %676  ;;  %vm693_vm8 = vcmp.ne.f32.partialorder %v683_v25, 0.0 }
 0x18f   : > { %v865_v39 = vadd.f32 %v1977_v3, %v864_v30  ;;  %vm691_vm6 = vcmp.ne.f32.partialorder %v677_v58, 0.0 }
 0x191   : > { %v878_v43 = vmax.f32 %v865_v39, 0.0 }
 0x196   : > { %v866_v41 = vpop.f32.mrf.mxu3  ;;  %v680_v9 = vpop.xlane.xlu2 %679 }
 0x197   : > { %v867_v42 = vadd.f32 %v1977_v3, %v866_v41  ;;  %vm692_vm7 = vcmp.ne.f32.partialorder %v680_v9, 0.0 }
 0x199   : > { %v879_v44 = vmax.f32 %v867_v42, 0.0 }
 0x19b   : > { %v884_v45 = vpack.c.bf16 %v879_v44, %v878_v43  ;;  %v686_v43 = vpop.xlane.xlu1 %685 }
 0x19c   : > { %vm694_vm9 = vcmp.ne.f32.partialorder %v686_v43, 0.0 }
 0x19d   : > { %972 = vmatmul.bf16.gmra.mxu2 %v884_v45 }
 0x19e   : > { %v869_v46 = vpop.f32.mrf.mxu3 }
 0x19f   : > { %v870_v47 = vadd.f32 %v1977_v3, %v869_v46 }
 0x1a1   : > { %v880_v50 = vmax.f32 %v870_v47, 0.0 }
 0x1a6   : > { %v871_v48 = vpop.f32.mrf.mxu3 }
 0x1a7   : > { %v872_v49 = vadd.f32 %v1977_v3, %v871_v48 }
 0x1a9   : > { %v881_v51 = vmax.f32 %v872_v49, 0.0 }
 0x1ab   : > { %v885_v52 = vpack.c.bf16 %v881_v51, %v880_v50 }
 0x1ad   : > { %977 = vmatmul.bf16.gmra.mxu2 %v885_v52 }
 0x1f4   : > { %v963_v54 = vpop.f32.mrf.mxu1 }
 0x1f5   : > { %v964_v0 = vadd.f32 %v1978_v60, %v963_v54 }
 0x1f7   : > { %v983_v7 = vmax.f32 %v964_v0, 0.0 }
 0x1f9   : > { %v1007_v15 = vsel %vm687_vm4, %v983_v7, 0.0 }
 0x1fa   : > { %v1016_v22 = vrot.slane %v1007_v15, 4 }
 0x1fc   : > { %v965_v59 = vpop.f32.mrf.mxu1  ;;  %v1017_v31 = vadd.f32 %v1016_v22, %v1007_v15 }
 0x1fd   : > { %v966_v62 = vadd.f32 %v1978_v60, %v965_v59 }
 0x1fe   : > { %v1018_v39 = vrot.slane %v1017_v31, 2 }
 0x1ff   : > { %v984_v4 = vmax.f32 %v966_v62, 0.0 }
 0x200   : > { %v1019_v50 = vadd.f32 %v1018_v39, %v1017_v31 }
 0x201   : > { %v1008_v12 = vsel %vm688_vm2, %v984_v4, 0.0 }
 0x202   : > { %v1022_v18 = vrot.slane %v1008_v12, 4 }
 0x204   : > { %v1023_v26 = vadd.f32 %v1022_v18, %v1008_v12  ;;  %v1015_v18 = vld [vmem:[#allocation2] sm:$0xff] }
 0x206   : > { %v1024_v35 = vrot.slane %v1023_v26, 2 }
 0x208   : > { %v1025_v44 = vadd.f32 %v1024_v35, %v1023_v26 }
 0x210   : > { %v968_v53 = vpop.f32.mrf.mxu2 }
 0x211   : > { %v969_v63 = vadd.f32 %v1978_v60, %v968_v53 }
 0x213   : > { %v985_v6 = vmax.f32 %v969_v63, 0.0 }
 0x215   : > { %v1009_v14 = vsel %vm689_vm3, %v985_v6, 0.0 }
 0x216   : > { %v1028_v20 = vrot.slane %v1009_v14, 4 }
 0x218   : > { %v970_v55 = vpop.f32.mrf.mxu2  ;;  %v1029_v29 = vadd.f32 %v1028_v20, %v1009_v14 }
 0x219   : > { %v971_v2 = vadd.f32 %v1978_v60, %v970_v55  ;;  %v1026_v55 = vrot.slane %v1025_v44, 1 }
 0x21a   : > { %v1030_v37 = vrot.slane %v1029_v29, 2 }
 0x21b   : > { %v986_v8 = vmax.f32 %v971_v2, 0.0  ;;  %v1027_v1 = vadd.f32 %v1026_v55, %v1025_v44 }
 0x21c   : > { %v1031_v48 = vadd.f32 %v1030_v37, %v1029_v29 }
 0x21d   : > { %v1010_v16 = vsel %vm690_vm5, %v986_v8, 0.0 }
 0x21e   : > { %v1034_v23 = vrot.slane %v1010_v16, 4  ;;  %v1032_v57 = vrot.slane %v1031_v48, 1 }
 0x220   : > { %v973_v61 = vpop.f32.mrf.mxu2  ;;  %v1035_v32 = vadd.f32 %v1034_v23, %v1010_v16 }
 0x221   : > { %v974_v3 = vadd.f32 %v1978_v60, %v973_v61  ;;  %v1020_v61 = vrot.slane %v1019_v50, 1 }
 0x222   : > { %v1036_v40 = vrot.slane %v1035_v32, 2 }
 0x223   : > { %v987_v10 = vmax.f32 %v974_v3, 0.0  ;;  %v1021_v5 = vadd.f32 %v1020_v61, %v1019_v50 }
 0x224   : > { %v1037_v51 = vadd.f32 %v1036_v40, %v1035_v32 }
 0x225   : > { %v1011_v19 = vsel %vm691_vm6, %v987_v10, 0.0  ;;  %v1073_v9 = vsel %vm1072_vm10, %v1027_v1, %v1021_v5 }
 0x226   : > { %v1040_v24 = vrot.slane %v1011_v19, 4  ;;  %v1038_v62 = vrot.slane %v1037_v51, 1 }
 0x228   : > { %v975_v11 = vpop.f32.mrf.mxu2  ;;  %v1041_v33 = vadd.f32 %v1040_v24, %v1011_v19  ;;  %v1039_v6 = vadd.f32 %v1038_v62, %v1037_v51 }
 0x229   : > { %v976_v13 = vadd.f32 %v1978_v60, %v975_v11 }
 0x22a   : > { %v1042_v42 = vrot.slane %v1041_v33, 2 }
 0x22b   : > { %v988_v17 = vmax.f32 %v976_v13, 0.0 }
 0x22c   : > { %v1043_v53 = vadd.f32 %v1042_v42, %v1041_v33 }
 0x22d   : > { %v1012_v21 = vsel %vm692_vm7, %v988_v17, 0.0 }
 0x22e   : > { %v1046_v27 = vrot.slane %v1012_v21, 4  ;;  %v1044_v0 = vrot.slane %v1043_v53, 1 }
 0x230   : > { %v978_v28 = vpop.f32.mrf.mxu2  ;;  %v1047_v36 = vadd.f32 %v1046_v27, %v1012_v21  ;;  %v1045_v8 = vadd.f32 %v1044_v0, %v1043_v53 }
 0x231   : > { %v979_v30 = vadd.f32 %v1978_v60, %v978_v28 }
 0x232   : > { %v1048_v45 = vrot.slane %v1047_v36, 2 }
 0x233   : > { %v989_v34 = vmax.f32 %v979_v30, 0.0 }
 0x234   : > { %v1049_v56 = vadd.f32 %v1048_v45, %v1047_v36 }
 0x235   : > { %v1013_v38 = vsel %vm693_vm8, %v989_v34, 0.0 }
 0x236   : > { %v1052_v41 = vrot.slane %v1013_v38, 4  ;;  %v1050_v2 = vrot.slane %v1049_v56, 1 }
 0x238   : > { %v1053_v46 = vadd.f32 %v1052_v41, %v1013_v38  ;;  %v980_v47 = vpop.f32.mrf.mxu2  ;;  %v1051_v10 = vadd.f32 %v1050_v2, %v1049_v56 }
 0x239   : > { %v981_v49 = vadd.f32 %v1978_v60, %v980_v47  ;;  %v1033_v60 = vadd.f32 %v1032_v57, %v1031_v48 }
 0x23a   : > { %v1054_v52 = vrot.slane %v1053_v46, 2 }
 0x23b   : > { %v990_v54 = vmax.f32 %v981_v49, 0.0  ;;  %v1075_v12 = vsel %vm1074_vm11, %v1033_v60, %v1073_v9 }
 0x23c   : > { %v1055_v58 = vadd.f32 %v1054_v52, %v1053_v46  ;;  %v1077_v14 = vsel %vm1076_vm12, %v1039_v6, %v1075_v12 }
 0x23d   : > { %v1014_v59 = vsel %vm694_vm9, %v990_v54, 0.0  ;;  %v1079_v16 = vsel %vm1078_vm13, %v1045_v8, %v1077_v14 }
 0x23e   : > { %v1058_v63 = vrot.slane %v1014_v59, 4  ;;  %v1056_v4 = vrot.slane %v1055_v58, 1  ;;  %v1081_v17 = vsel %vm1080_vm14, %v1051_v10, %v1079_v16 }
 0x240   : > { %v1059_v3 = vadd.f32 %v1058_v63, %v1014_v59  ;;  %v1057_v13 = vadd.f32 %v1056_v4, %v1055_v58 }
 0x242   : > { %v1060_v7 = vrot.slane %v1059_v3, 2  ;;  %v1083_v20 = vsel %vm1082_vm15, %v1057_v13, %v1081_v17 }
 0x244   : > { %v1061_v11 = vadd.f32 %v1060_v7, %v1059_v3 }
 0x246   : > { %v1062_v15 = vrot.slane %v1061_v11, 1 }
 0x248   : > { %v1063_v19 = vadd.f32 %v1062_v15, %v1061_v11 }
 0x249   : > { %1092 = sbr.rel (%p1653_p8) target bundleno = 1164 (0x48c), region = 141 }
 0x24a   : > { %v1085_v21 = vsel %vm1084_vm0, %v1063_v19, %v1083_v20 }
 0x24b   : > { %v1087_v22 = vadd.f32 %v1085_v21, %v1015_v18 }
 0x24d   : > { %1088 = vst [vmem:[#allocation2] sm:$0xff] %v1087_v22 }
 0x24e   : > { %v1813_v23 = vld [vmem:[%s2657_s14 + $0x38] sm:$0xff]  ;;  %v1812_v24 = vld [vmem:[%s2657_s14 + $0x30] sm:$0xff]  ;;  %v1821_v25 = vld [vmem:[#allocation4 + $0x38] sm:$0xff] }
 0x24f   : > { %1163 = vmatpush.bf16.msra.mxu0 %v1813_v23  ;;  %1246 = vmatpush.bf16.msra.mxu1 %v1821_v25  ;;  %v1820_v26 = vld [vmem:[#allocation4 + $0x30] sm:$0xff]  ;;  %v1811_v27 = vld [vmem:[%s2657_s14 + $0x28] sm:$0xff]  ;;  %v1819_v28 = vld [vmem:[#allocation4 + $0x28] sm:$0xff] }
 0x250   : > { %v1810_v29 = vld [vmem:[%s2657_s14 + $0x20] sm:$0xff]  ;;  %v1818_v30 = vld [vmem:[#allocation4 + $0x20] sm:$0xff]  ;;  %v1809_v31 = vld [vmem:[%s2657_s14 + $0x18] sm:$0xff] }
 0x251   : > { %v1817_v32 = vld [vmem:[#allocation4 + $0x18] sm:$0xff]  ;;  %v1808_v33 = vld [vmem:[%s2657_s14 + $0x10] sm:$0xff]  ;;  %v1816_v34 = vld [vmem:[#allocation4 + $0x10] sm:$0xff] }
 0x252   : > { %v1807_v35 = vld [vmem:[%s2657_s14 + $0x8] sm:$0xff]  ;;  %v1806_v36 = vld [vmem:[%s2657_s14] sm:$0xff]  ;;  %v1815_v39 = vld [vmem:[#allocation4 + $0x8] sm:$0xff] }
 0x253   : > { %1164 = vmatpush.bf16.msra.mxu0 %v1812_v24  ;;  %1247 = vmatpush.bf16.msra.mxu1 %v1820_v26  ;;  %v1814_v40 = vld [vmem:[#allocation4] sm:$0xff]  ;;  %v1829_v41 = vld [vmem:[#allocation7 + $0x38] sm:$0xff]  ;;  %v1828_v42 = vld [vmem:[#allocation7 + $0x30] sm:$0xff] }
 0x254   : > { %v1093_v37 = vld [vmem:[#allocation2] sm:$0xff]  ;;  %1329 = vmatpush.bf16.msra.mxu2 %v1829_v41  ;;  %v1827_v43 = vld [vmem:[#allocation7 + $0x28] sm:$0xff]  ;;  %v1826_v44 = vld [vmem:[#allocation7 + $0x20] sm:$0xff] }
 0x255   : > { %v1111_v38 = vpack.c.bf16 %v1093_v37, %v1093_v37  ;;  %v1825_v45 = vld [vmem:[#allocation7 + $0x18] sm:$0xff]  ;;  %v1824_v46 = vld [vmem:[#allocation7 + $0x10] sm:$0xff]  ;;  %v1823_v53 = vld [vmem:[#allocation7 + $0x8] sm:$0xff] }
 0x256   : > { %v1979_v47 = vld [vmem:[%s2658_s4] ss:$0 sm:$0xff]  ;;  %v1822_v54 = vld [vmem:[#allocation7] sm:$0xff]  ;;  %v1836_v56 = vld [vmem:[#allocation9 + $0x30] sm:$0xff] }
 0x257   : > { %1165 = vmatpush.bf16.msra.mxu0 %v1811_v27  ;;  %1248 = vmatpush.bf16.msra.mxu1 %v1819_v28  ;;  %v1837_v55 = vld [vmem:[#allocation9 + $0x38] sm:$0xff]  ;;  %v1835_v57 = vld [vmem:[#allocation9 + $0x28] sm:$0xff]  ;;  %v1834_v58 = vld [vmem:[#allocation9 + $0x20] sm:$0xff] }
 0x258   : > { %1330 = vmatpush.bf16.msra.mxu2 %v1828_v42  ;;  %1412 = vmatpush.bf16.msra.mxu3 %v1837_v55  ;;  %v1833_v59 = vld [vmem:[#allocation9 + $0x18] sm:$0xff]  ;;  %v1832_v61 = vld [vmem:[#allocation9 + $0x10] sm:$0xff]  ;;  %v1831_v60 = vld [vmem:[#allocation9 + $0x8] sm:$0xff] }
 0x259   : > { %v1980_v62 = vld [vmem:[%s2659_s23] ss:$0 sm:$0xff]  ;;  %v1830_v4 = vld [vmem:[#allocation9] sm:$0xff] }
 0x25a   : > { %v1981_v5 = vld [vmem:[%s2660_s11] ss:$0 sm:$0xff] }
 0x25b   : > { %1166 = vmatpush.bf16.msra.mxu0 %v1810_v29  ;;  %1249 = vmatpush.bf16.msra.mxu1 %v1818_v30  ;;  %v1982_v11 = vld [vmem:[%s2661_s24] ss:$0 sm:$0xff] }
 0x25c   : > { %1331 = vmatpush.bf16.msra.mxu2 %v1827_v43  ;;  %1413 = vmatpush.bf16.msra.mxu3 %v1836_v56 }
 0x25f   : > { %1167 = vmatpush.bf16.msra.mxu0 %v1809_v31  ;;  %1250 = vmatpush.bf16.msra.mxu1 %v1817_v32 }
 0x260   : > { %1332 = vmatpush.bf16.msra.mxu2 %v1826_v44  ;;  %1414 = vmatpush.bf16.msra.mxu3 %v1835_v57 }
 0x263   : > { %1168 = vmatpush.bf16.msra.mxu0 %v1808_v33  ;;  %1251 = vmatpush.bf16.msra.mxu1 %v1816_v34 }
 0x264   : > { %1333 = vmatpush.bf16.msra.mxu2 %v1825_v45  ;;  %1415 = vmatpush.bf16.msra.mxu3 %v1834_v58 }
 0x267   : > { %1169 = vmatpush.bf16.msra.mxu0 %v1807_v35  ;;  %1252 = vmatpush.bf16.msra.mxu1 %v1815_v39 }
 0x268   : > { %1334 = vmatpush.bf16.msra.mxu2 %v1824_v46  ;;  %1416 = vmatpush.bf16.msra.mxu3 %v1833_v59 }
 0x26b   : > { %1170 = vmatpush.bf16.msra.mxu0 %v1806_v36  ;;  %1253 = vmatpush.bf16.msra.mxu1 %v1814_v40 }
 0x26c   : > { %1335 = vmatpush.bf16.msra.mxu2 %v1823_v53  ;;  %1417 = vmatpush.bf16.msra.mxu3 %v1832_v61 }
 0x26e   : > { %1171 = vmatmul.bf16.vlgmr.msra.gmra.mxu0 %v1111_v38 }
 0x270   : > { %1336 = vmatpush.bf16.msra.mxu2 %v1822_v54  ;;  %1418 = vmatpush.bf16.msra.mxu3 %v1831_v60 }
 0x274   : > { %1419 = vmatpush.bf16.msra.mxu3 %v1830_v4 }
 0x2eb   : > { %v1172_v48 = vpop.f32.mrf.mxu0 }
 0x2ec   : > { %v1173_v49 = vadd.f32 %v1979_v47, %v1172_v48 }
 0x2ee   : > { %v1176_v50 = vmax.f32 %v1173_v49, 0.0 }
 0x2f0   : > { %v1194_v51 = vpack.c.bf16 %v1176_v50, %v1176_v50 }
 0x2f2   : > { %1254 = vmatmul.bf16.vlgmr.msra.gmra.mxu1 %v1194_v51 }
 0x2f3   : > { %v1174_v52 = vpop.f32.mrf.mxu0 }
 0x36f   : > { %v1255_v63 = vpop.f32.mrf.mxu1 }
 0x370   : > { %v1256_v0 = vadd.f32 %v1980_v62, %v1255_v63 }
 0x372   : > { %v1259_v1 = vmax.f32 %v1256_v0, 0.0 }
 0x374   : > { %v1277_v2 = vpack.c.bf16 %v1259_v1, %v1259_v1 }
 0x376   : > { %1337 = vmatmul.bf16.vlgmr.msra.gmra.mxu2 %v1277_v2 }
 0x377   : > { %v1257_v3 = vpop.f32.mrf.mxu1 }
 0x3f9   : > { %v1338_v6 = vpop.f32.mrf.mxu2 }
 0x3fa   : > { %v1339_v7 = vadd.f32 %v1981_v5, %v1338_v6 }
 0x3fc   : > { %v1342_v8 = vmax.f32 %v1339_v7, 0.0 }
 0x3fe   : > { %v1360_v9 = vpack.c.bf16 %v1342_v8, %v1342_v8 }
 0x400   : > { %1420 = vmatmul.bf16.vlgmr.msra.gmra.mxu3 %v1360_v9 }
 0x401   : > { %v1340_v10 = vpop.f32.mrf.mxu2 }
 0x483   : > { %v1421_v12 = vpop.f32.mrf.mxu3 }
 0x484   : > { %v1422_v13 = vadd.f32 %v1982_v11, %v1421_v12 }
 0x486   : > { %1425 = vst [vmem:[%s630_s21] sm:$0xff] %v1422_v13 }
 0x48b   : > { %v1423_v14 = vpop.f32.mrf.mxu3 }
 0x48c PF: > { %s2662_s10 = sld [smem:[#allocation16_spill]]  ;;  %s1439_s7 = sshll.u32 %s630_s21, 4  ;;  %s1440_s7 = int_to_ptr.vmem [resolvable:$true] %s1439_s7 }
 0x48d   : > { %s2664_s4 = sld [smem:[#allocation32_spill]]  ;;  %s1427_s8 = scalar_lea.sflag [#allocation6], %s628_s16 }
 0x492   : > { %s1783_s6 = sshll.u32 %s2662_s10, 3 }
 0x493   : > { %s1437_s28 = scalar_lea.hbm %s2664_s4, %s1783_s6  ;;  %s2093_s24 = scalar_lea.hbm %s2664_s4, 16 }
 0x494   : > { %s1441_s23 = sshll.u32 %s1437_s28, 4  ;;  %s1442_s23 = int_to_ptr.hbm [resolvable:$true] %s1441_s23 }
 0x495   : > { %s2087_s18 = sshra.s32 %s1442_s23, 4  ;;  %s2088_s18 = int_to_ptr.hbm [resolvable:$true] %s2087_s18 }
 0x496   : > { %s2089_s11 = scalar_lea.hbm %s2088_s18, 8  ;;  %p2094_p13 = scmp.lt.s32.totalorder %s2088_s18, %s2664_s4 }
 0x497   : > { %p2090_p9 = scmp.ne.s32.totalorder %s2088_s18, %s2089_s11  ;;  %p2095_p0 = scmp.lt.s32.totalorder %s2093_s24, %s2089_s11 }
 0x499   : > { %p2091_p10 = pnand %p2090_p9, %p2351_p7  ;;  %p2096_p1 = por %p2095_p0, %p2094_p13 }
 0x49b   : > { %p2092_p11 = pneg %p2091_p10 }
 0x49d   : > { %p2097_p2 = pnand %p2096_p1, %p2092_p11 }
 0x49f   : > { %2100 = shalt.err (!%p2097_p2)
}
 0x4a0   : > { %1867 = dma.vmem_to_hbm [thread:$0]  (%p2351_p7), %s1440_s7, 128, %s1442_s23, %s1427_s8  }
 0x4a1 PF: > { %s2665_s16 = sld [smem:[#allocation14_spill]]  ;;  %p1889_p4 = scmp.ge.s32.totalorder %s2191_s27, 2 }
 0x4a3   : > { %p1880_p5 = pnand %p1889_p4, %p2359_p12 }
 0x4a5   : > { %p1881_p6 = pneg %p1880_p5 }
 0x4a7   : > { %s1453_s21 = sand.u32 1, %s2665_s16  }
 0x4a8   : > { %s1454_s12 = scalar_lea.sflag [#allocation6], %s1453_s21 }
 0x4a9   : > { %2150 = dma.done.wait (%p1881_p6), %s1454_s12, 128  }
 0x4aa   : > { %2152 = vsyncadd (%p1881_p6), %s1454_s12, 4294967168  ;;  %s30_s27 = sadd.s32 1, %s2191_s27   ;;  %s2667_s15 = sld [smem:[#allocation15_spill]] }
 0x4ab   : > { %p27_p3 = scmp.ge.s32.totalorder %s30_s27, 8   ;;  %s2668_s20 = sld [smem:[#allocation21_spill]] }
 0x4ac   : > { %s2669_s5 = sld [smem:[#allocation22_spill]]  ;;  %s2672_s18 = smov %s2159_s19 }
 0x4ad   : > { %s2670_s28 = sld [smem:[#allocation17_spill]]  ;;  %s2674_s21 = smov %s2171_s22 }
 0x4ae   : > { %s2671_s7 = sld [smem:[#allocation18_spill]]  ;;  %s2676_s23 = smov %s2183_s25 }
 0x4af   : > { %s2677_s24 = smov %s2187_s26 }
 0x4b0   : > { %s2673_s19 = smov %s2667_s15  ;;  %29 = sbr.rel (!%p27_p3) target bundleno = 19 (0x13), region = 182 }
 0x4b2   : > { %s2675_s22 = smov %s2669_s5 }
 0x4b3   : > { %s2678_s25 = smov %s2670_s28 }
 0x4b4   : > { %s2679_s26 = smov %s2671_s7 }
 0x4b5   :  { %1460 = vsyncpa [#allocation5], 1 }
 0x4b6   :  { %1462 = vsyncpa [#allocation5 + $0x1], 1 }
 0x4b7   :  { %1463 = vsyncpa [#allocation8], 1 }
 0x4b8   :  { %1464 = vsyncpa [#allocation6], 1 }
 0x4b9   :  { %1466 = vsyncpa [#allocation6 + $0x1], 1 }

</bundles_post_ra>
